<compile_context>
chip_gen: v5e
topology: v5e:2x2
jax: 0.10.0
libtpu: 0.0.40
codegen_flags: <defaults>
</compile_context>

<pallas_src>
import math
import jax
import jax.numpy as jnp
from jax.experimental import pallas as pl
from jax.experimental.pallas import tpu as pltpu


def _round_up(n, m):
    return ((n + m - 1) // m) * m


def _mxu_pad(n):
    # v6e / v7x MXUs are 2x256^2: align large dims to 256 so each pass fills
    # the systolic array; small dims (and v5e's 128^2 MXU) are fine at 128.
    return _round_up(n, 256) if n >= 256 else _round_up(n, 128)


def timestep_embedding_kernel(x_ref, w1_ref, b1_ref, w2_ref, b2_ref, o_ref,
                              acc_ref):
    """One (batch-tile i, F-chunk k) step of out = silu(x@W1+b1) @ W2 + b2."""
    k = pl.program_id(1)

    @pl.when(k == 0)
    def _():
        acc_ref[...] = jnp.zeros_like(acc_ref)

    # First linear for this F chunk: bf16 MXU operands, f32 accumulation.
    h = jnp.dot(x_ref[...].astype(jnp.bfloat16), w1_ref[...],
                preferred_element_type=jnp.float32)
    h = h + b1_ref[...]                       # [1, TF] broadcasts over batch (f32)
    h = h * jax.nn.sigmoid(h)                 # SiLU in f32 (EUP sigmoid + VPU mul)

    # Second linear, accumulated over F chunks into the f32 scratch.
    acc_ref[...] += jnp.dot(h.astype(jnp.bfloat16), w2_ref[...],
                            preferred_element_type=jnp.float32)

    @pl.when(k == pl.num_programs(1) - 1)
    def _():
        o_ref[...] = (acc_ref[...] + b2_ref[...]).astype(o_ref.dtype)


def prepare_params(w1, b1, w2, b2):
    """One-time pad + bf16 cast of the weights.  Cache the result: keeps the
    per-call path free of the wrapper-side pad/cast HBM pass.

    w1: [C_in, F], b1: [F], w2: [F, C_out], b2: [C_out]
    (weights stored transposed relative to PyTorch nn.Linear)."""
    C_in, F = w1.shape
    C_out = w2.shape[1]
    C_in_pad = _round_up(C_in, 128)           # lane-dense K for the first matmul
    F_pad = _mxu_pad(F)
    C_out_pad = _mxu_pad(C_out)
    # Zero-padding is exact: padded x columns hit zero W1 rows, silu(0)=0 feeds
    # zero W2 rows, and padded output columns are sliced off.
    w1_p = jnp.pad(w1, ((0, C_in_pad - C_in), (0, F_pad - F))).astype(jnp.bfloat16)
    w2_p = jnp.pad(w2, ((0, F_pad - F), (0, C_out_pad - C_out))).astype(jnp.bfloat16)
    b1_p = jnp.pad(b1, (0, F_pad - F)).astype(jnp.float32).reshape(1, F_pad)
    b2_p = jnp.pad(b2, (0, C_out_pad - C_out)).astype(jnp.float32).reshape(1, C_out_pad)
    return {"w1": w1_p, "b1": b1_p, "w2": w2_p, "b2": b2_p}


def timestep_embedding_prepared(x, params, out_channels, *,
                                max_batch_tile=512, max_f_chunk=2048,
                                target_grid=4,
                                vmem_budget_bytes=24 * 1024 * 1024):
    """Fused MLP forward using pre-padded / pre-cast params (see prepare_params).

    x: [B, C_in]  ->  returns [B, out_channels] in x.dtype.
    """
    B, C_in = x.shape
    w1_p, b1_p, w2_p, b2_p = params["w1"], params["b1"], params["w2"], params["b2"]
    C_in_pad, F_pad = w1_p.shape
    C_out_pad = w2_p.shape[1]
    C_out = out_channels
    assert C_in <= C_in_pad and C_out <= C_out_pad
    out_dtype = x.dtype
    x_bytes = jnp.dtype(x.dtype).itemsize
    out_bytes = jnp.dtype(out_dtype).itemsize

    # --- F chunking: bound the f32 hidden intermediate and the w1/w2 blocks. ---
    TF = F_pad
    while TF > max_f_chunk and TF % 256 == 0:
        TF //= 2
    nf = F_pad // TF

    # --- Batch tile: keep grid >= target_grid (megacore / v7x two-TC sharding),
    #     bound batch-pad waste to < TB rows, stay inside the VMEM budget. ---
    TB = min(max_batch_tile, max(8, _round_up(pl.cdiv(B, target_grid), 8)))

    def vmem_bytes(tb):
        nbuf = 1 if nf == 1 else 2            # weights single-buffered if constant
        weights = (C_in_pad * TF + TF * C_out_pad) * 2 * nbuf
        biases = TF * 4 * nbuf + C_out_pad * 4
        x_buf = 2 * tb * C_in_pad * x_bytes   # double-buffered x tiles
        out_buf = 2 * tb * C_out_pad * out_bytes
        acc = tb * C_out_pad * 4
        hidden = 2 * tb * TF * 4              # h + SiLU temporaries (estimate)
        return weights + biases + x_buf + out_buf + acc + hidden

    while TB > 8 and vmem_bytes(TB) > vmem_budget_bytes:
        TB = max(8, _round_up(TB // 2, 8))

    nb = pl.cdiv(B, TB)
    B_pad = nb * TB

    # Only x still needs a (cheap) per-call pad; it is cast to bf16 in-kernel.
    x_p = jnp.pad(x, ((0, B_pad - B), (0, C_in_pad - C_in)))

    resident = pl.Buffered(1)                 # single-buffer constant blocks

    def wspec(shape, index_map, constant):
        if constant:
            return pl.BlockSpec(shape, index_map, pipeline_mode=resident)
        return pl.BlockSpec(shape, index_map)

    flops = 2 * B_pad * (C_in_pad * F_pad + F_pad * C_out_pad)
    transcendentals = B_pad * F_pad
    bytes_accessed = (
        B_pad * C_in_pad * x_bytes            # x
        + C_in_pad * F_pad * 2                # w1 (bf16)
        + F_pad * C_out_pad * 2               # w2 (bf16)
        + (F_pad + C_out_pad) * 4             # biases (f32)
        + B_pad * C_out_pad * out_bytes       # output
    )

    out_padded = pl.pallas_call(
        timestep_embedding_kernel,
        out_shape=jax.ShapeDtypeStruct((B_pad, C_out_pad), out_dtype),
        grid=(nb, nf),
        in_specs=[
            pl.BlockSpec((TB, C_in_pad), lambda i, k: (i, 0)),        # x tile
            wspec((C_in_pad, TF), lambda i, k: (0, k), nf == 1),      # w1
            wspec((1, TF), lambda i, k: (0, k), nf == 1),             # b1
            wspec((TF, C_out_pad), lambda i, k: (k, 0), nf == 1),     # w2
            wspec((1, C_out_pad), lambda i, k: (0, 0), True),         # b2
        ],
        out_specs=pl.BlockSpec((TB, C_out_pad), lambda i, k: (i, 0)),
        scratch_shapes=[pltpu.VMEM((TB, C_out_pad), jnp.float32)],
        compiler_params=pltpu.CompilerParams(
            dimension_semantics=("parallel", "arbitrary")),
        cost_estimate=pl.CostEstimate(
            flops=flops,
            transcendentals=transcendentals,
            bytes_accessed=bytes_accessed),
    )(x_p, w1_p, b1_p, w2_p, b2_p)

    return out_padded[:B, :C_out]


def timestep_embedding(x, w1, b1, w2, b2, **kwargs):
    """Convenience wrapper (pads/casts weights per call).  In hot loops, call
    prepare_params() once and reuse it with timestep_embedding_prepared()."""
    return timestep_embedding_prepared(x, prepare_params(w1, b1, w2, b2),
                                       w2.shape[1], **kwargs)


def init_params(key, in_channels, out_channels, filter_channels, dtype=jnp.float32):
    """Deterministic init mimicking PyTorch nn.Linear (uniform +-1/sqrt(fan_in)).
    Weights are stored transposed: [fan_in, fan_out]."""
    k1, k2, k3, k4 = jax.random.split(key, 4)
    bound1 = 1.0 / math.sqrt(in_channels)
    bound2 = 1.0 / math.sqrt(filter_channels)
    w1 = jax.random.uniform(k1, (in_channels, filter_channels), dtype,
                            minval=-bound1, maxval=bound1)
    b1 = jax.random.uniform(k2, (filter_channels,), dtype,
                            minval=-bound1, maxval=bound1)
    w2 = jax.random.uniform(k3, (filter_channels, out_channels), dtype,
                            minval=-bound2, maxval=bound2)
    b2 = jax.random.uniform(k4, (out_channels,), dtype,
                            minval=-bound2, maxval=bound2)
    return w1, b1, w2, b2


if __name__ == "__main__":
    in_channels = 32
    filter_channels = 64
    out_channels = 32
    batch = 8

    key = jax.random.PRNGKey(0)
    kx, kp = jax.random.split(key)
    x = jax.random.normal(kx, (batch, in_channels), dtype=jnp.float32)
    w1, b1, w2, b2 = init_params(kp, in_channels, out_channels, filter_channels)

    # One-time weight preparation (cache this outside the call path).
    params = prepare_params(w1, b1, w2, b2)
    out = timestep_embedding_prepared(x, params, out_channels)
    out = jax.block_until_ready(out)

    # Pure-JAX f32 reference.  The kernel feeds the MXU bf16 operands (with
    # f32 accumulation), so tolerance is loosened accordingly.
    h_ref = x @ w1 + b1
    h_ref = h_ref * jax.nn.sigmoid(h_ref)
    ref = h_ref @ w2 + b2
    assert out.shape == (batch, out_channels)
    assert jnp.allclose(out, ref, atol=2e-2, rtol=2e-2), (
        float(jnp.max(jnp.abs(out - ref))))

    print("KERNEL_OK")
</pallas_src>

<mosaic_0001>
module attributes {stable_mosaic.version = 11 : i64} {
  func.func @timestep_embedding_kernel(%arg0: i32, %arg1: i32, %arg2: memref<8x128xf32, #tpu.memory_space<vmem>>, %arg3: memref<128x128xbf16, #tpu.memory_space<vmem>>, %arg4: memref<1x128xf32, #tpu.memory_space<vmem>>, %arg5: memref<128x128xbf16, #tpu.memory_space<vmem>>, %arg6: memref<1x128xf32, #tpu.memory_space<vmem>>, %arg7: memref<8x128xf32, #tpu.memory_space<vmem>>, %arg8: memref<8x128xf32, #tpu.memory_space<vmem>>) attributes {dimension_semantics = [#tpu.dimension_semantics<parallel>, #tpu.dimension_semantics<arbitrary>], iteration_bounds = array<i64: 1, 1>, scalar_prefetch = 0 : i64, scratch_operands = 1 : i64, tpu.core_type = #tpu.core_type<tc>, window_params = [{transform_indices = @transform_0, window_bounds = array<i64: 8, 128>}, {pipeline_mode = #tpu.pipeline_mode<synchronous>, transform_indices = @transform_1, window_bounds = array<i64: 128, 128>}, {pipeline_mode = #tpu.pipeline_mode<synchronous>, transform_indices = @transform_2, window_bounds = array<i64: 1, 128>}, {pipeline_mode = #tpu.pipeline_mode<synchronous>, transform_indices = @transform_3, window_bounds = array<i64: 128, 128>}, {pipeline_mode = #tpu.pipeline_mode<synchronous>, transform_indices = @transform_4, window_bounds = array<i64: 1, 128>}, {transform_indices = @transform_5, window_bounds = array<i64: 8, 128>}]} {
    %c0_i32 = arith.constant 0 : i32
    %0 = arith.cmpi eq, %arg1, %c0_i32 : i32
    %1 = arith.extui %0 : i1 to i32
    %c0_i32_0 = arith.constant 0 : i32
    %2 = arith.cmpi ne, %1, %c0_i32_0 : i32
    scf.if %2 {
      %cst_16 = arith.constant 0.000000e+00 : f32
      %25 = vector.broadcast %cst_16 : f32 to vector<8x128xf32>
      %c0_17 = arith.constant 0 : index
      %c0_18 = arith.constant 0 : index
      %26 = vector.load %arg8[%c0_17, %c0_18] : memref<8x128xf32, #tpu.memory_space<vmem>>, vector<8x128xf32>
      tpu.vector_store %arg8[%c0_17, %c0_18], %25 {strides = array<i32>} : memref<8x128xf32, #tpu.memory_space<vmem>>, vector<8x128xf32>,
    } else {
    }
    %c0 = arith.constant 0 : index
    %c0_1 = arith.constant 0 : index
    %3 = vector.load %arg2[%c0, %c0_1] : memref<8x128xf32, #tpu.memory_space<vmem>>, vector<8x128xf32>
    %4 = arith.truncf %3 : vector<8x128xf32> to vector<8x128xbf16>
    %c0_2 = arith.constant 0 : index
    %c0_3 = arith.constant 0 : index
    %5 = vector.load %arg3[%c0_2, %c0_3] : memref<128x128xbf16, #tpu.memory_space<vmem>>, vector<128x128xbf16>
    %cst = arith.constant dense<0.000000e+00> : vector<8x128xf32>
    %6 = tpu.matmul %4, %5, %cst {dimension_numbers = #tpu.dot_dimension_numbers<[1], [0], [0], [1], [0, 0, 1, 1], [], []>} : vector<8x128xbf16>, vector<128x128xbf16>, vector<8x128xf32> -> vector<8x128xf32>
    %c0_4 = arith.constant 0 : index
    %c0_5 = arith.constant 0 : index
    %7 = vector.load %arg4[%c0_4, %c0_5] : memref<1x128xf32, #tpu.memory_space<vmem>>, vector<1x128xf32>
    %8 = vector.broadcast %7 : vector<1x128xf32> to vector<8x128xf32>
    %9 = arith.addf %6, %8 : vector<8x128xf32>
    %10 = arith.negf %9 : vector<8x128xf32>
    %11 = math.exp %10 : vector<8x128xf32>
    %cst_6 = arith.constant 1.000000e+00 : f32
    %12 = vector.broadcast %cst_6 : f32 to vector<8x128xf32>
    %13 = arith.addf %12, %11 : vector<8x128xf32>
    %14 = arith.divf %12, %13 : vector<8x128xf32>
    %15 = arith.mulf %9, %14 : vector<8x128xf32>
    %c0_7 = arith.constant 0 : index
    %c0_8 = arith.constant 0 : index
    %16 = vector.load %arg8[%c0_7, %c0_8] : memref<8x128xf32, #tpu.memory_space<vmem>>, vector<8x128xf32>
    %17 = arith.truncf %15 : vector<8x128xf32> to vector<8x128xbf16>
    %c0_9 = arith.constant 0 : index
    %c0_10 = arith.constant 0 : index
    %18 = vector.load %arg5[%c0_9, %c0_10] : memref<128x128xbf16, #tpu.memory_space<vmem>>, vector<128x128xbf16>
    %cst_11 = arith.constant dense<0.000000e+00> : vector<8x128xf32>
    %19 = tpu.matmul %17, %18, %cst_11 {dimension_numbers = #tpu.dot_dimension_numbers<[1], [0], [0], [1], [0, 0, 1, 1], [], []>} : vector<8x128xbf16>, vector<128x128xbf16>, vector<8x128xf32> -> vector<8x128xf32>
    %20 = arith.addf %16, %19 : vector<8x128xf32>
    %c0_12 = arith.constant 0 : index
    %c0_13 = arith.constant 0 : index
    %21 = vector.load %arg8[%c0_12, %c0_13] : memref<8x128xf32, #tpu.memory_space<vmem>>, vector<8x128xf32>
    tpu.vector_store %arg8[%c0_12, %c0_13], %20 {strides = array<i32>} : memref<8x128xf32, #tpu.memory_space<vmem>>, vector<8x128xf32>,
    %c0_i32_14 = arith.constant 0 : i32
    %22 = arith.cmpi eq, %arg1, %c0_i32_14 : i32
    %23 = arith.extui %22 : i1 to i32
    %c0_i32_15 = arith.constant 0 : i32
    %24 = arith.cmpi ne, %23, %c0_i32_15 : i32
    scf.if %24 {
      %c0_16 = arith.constant 0 : index
      %c0_17 = arith.constant 0 : index
      %25 = vector.load %arg8[%c0_16, %c0_17] : memref<8x128xf32, #tpu.memory_space<vmem>>, vector<8x128xf32>
      %c0_18 = arith.constant 0 : index
      %c0_19 = arith.constant 0 : index
      %26 = vector.load %arg6[%c0_18, %c0_19] : memref<1x128xf32, #tpu.memory_space<vmem>>, vector<1x128xf32>
      %27 = vector.broadcast %26 : vector<1x128xf32> to vector<8x128xf32>
      %28 = arith.addf %25, %27 : vector<8x128xf32>
      %c0_20 = arith.constant 0 : index
      %c0_21 = arith.constant 0 : index
      %29 = vector.load %arg7[%c0_20, %c0_21] : memref<8x128xf32, #tpu.memory_space<vmem>>, vector<8x128xf32>
      tpu.vector_store %arg7[%c0_20, %c0_21], %28 {strides = array<i32>} : memref<8x128xf32, #tpu.memory_space<vmem>>, vector<8x128xf32>,
    } else {
    }
    return
  }
  func.func @transform_0(%arg0: i32, %arg1: i32) -> (i32, i32) {
    %c0_i32 = arith.constant 0 : i32
    %c0_i32_0 = arith.constant 0 : i32
    return %arg0, %c0_i32 : i32, i32
  }
  func.func @transform_1(%arg0: i32, %arg1: i32) -> (i32, i32) {
    %c0_i32 = arith.constant 0 : i32
    %c0_i32_0 = arith.constant 0 : i32
    return %c0_i32, %arg1 : i32, i32
  }
  func.func @transform_2(%arg0: i32, %arg1: i32) -> (i32, i32) {
    %c0_i32 = arith.constant 0 : i32
    %c0_i32_0 = arith.constant 0 : i32
    return %c0_i32, %arg1 : i32, i32
  }
  func.func @transform_3(%arg0: i32, %arg1: i32) -> (i32, i32) {
    %c0_i32 = arith.constant 0 : i32
    %c0_i32_0 = arith.constant 0 : i32
    return %arg1, %c0_i32 : i32, i32
  }
  func.func @transform_4(%arg0: i32, %arg1: i32) -> (i32, i32) {
    %c0_i32 = arith.constant 0 : i32
    %c0_i32_0 = arith.constant 0 : i32
    %c0_i32_1 = arith.constant 0 : i32
    return %c0_i32, %c0_i32_0 : i32, i32
  }
  func.func @transform_5(%arg0: i32, %arg1: i32) -> (i32, i32) {
    %c0_i32 = arith.constant 0 : i32
    %c0_i32_0 = arith.constant 0 : i32
    return %arg0, %c0_i32 : i32, i32
  }
}

</mosaic_0001>

<bundles_post_ra>
// kernel: tpu_custom_call.1
= control target key start
LH: loop header
LB: loop body
LE: loop exit
PB: predicated region body
PF: predicated region fallthrough
CT: control target
= control target key end

     0   :  { %10 = vsyncpa [#allocation4], 0  ;;  %s532_s0 = inlined_call_operand.hbm [shape: f32[8,128], index: 0, kind: input, shape index: {}]   ;;  %s533_s1 = inlined_call_operand.hbm [shape: bf16[128,128], index: 1, kind: input, shape index: {}]   ;;  %s534_s2 = inlined_call_operand.vmem [shape: f32[1,128], index: 2, kind: input, shape index: {}]   ;;  %s535_s3 = inlined_call_operand.hbm [shape: bf16[128,128], index: 3, kind: input, shape index: {}]   ;;  %s536_s4 = inlined_call_operand.vmem [shape: f32[1,128], index: 4, kind: input, shape index: {}]   ;;  %s537_s5 = inlined_call_operand.hbm [shape: f32[8,128], index: 5, kind: output, shape index: {}]  }
   0x1   :  { %11 = vsyncpa [#allocation7], 0  ;;  %s28_s20 = sshll.u32 %s533_s1, 4  ;;  %s29_s20 = int_to_ptr.hbm [resolvable:$true] %s28_s20 }
   0x2   :  { %12 = vsyncpa [#allocation5], 0  ;;  %s478_s21 = smov [#allocation6]   ;;  %s18_s25 = sshll.u32 %s532_s0, 4  ;;  %s19_s25 = int_to_ptr.hbm [resolvable:$true] %s18_s25 }
   0x3   :  { %s30_s22 = sshll.u32 %s478_s21, 4  ;;  %s479_s26 = smov 64   ;;  %s31_s22 = int_to_ptr.vmem [resolvable:$true] %s30_s22 }
   0x4   :  { %s480_s27 = smov 4   ;;  %s481_s28 = smov [#allocation3]  }
   0x5   :  { %36 = dma.hbm_to_vmem [thread:$0]  %s29_s20, 1024, %s31_s22, [#allocation7], %s479_s26, %s479_s26, %s480_s27  }
   0x6   :  { %s20_s29 = sshll.u32 %s481_s28, 4  ;;  %s43_s7 = sshll.u32 %s535_s3, 4  ;;  %s21_s29 = int_to_ptr.vmem [resolvable:$true] %s20_s29  ;;  %s44_s7 = int_to_ptr.hbm [resolvable:$true] %s43_s7 }
   0x7   :  { %23 = dma.hbm_to_vmem [thread:$0]  %s19_s25, 128, %s21_s29, [#allocation4]  }
   0x8   :  { %s482_s1 = smov [#allocation8]  }
   0x9   :  { %s45_s8 = sshll.u32 %s482_s1, 4  ;;  %s46_s8 = int_to_ptr.vmem [resolvable:$true] %s45_s8 }
   0xa   :  { %51 = dma.hbm_to_vmem [thread:$0]  %s44_s7, 1024, %s46_s8, [#allocation7], %s479_s26, %s479_s26, %s480_s27  }
   0xb   :  { %472 = dma.done.wait [#allocation4], 128  }
   0xc   :  { %473 = vsyncadd [#allocation4], 4294967168 }
   0xd   :  { %474 = dma.done.wait [#allocation7], 2048  }
   0xe   :  { %475 = vsyncadd [#allocation7], 4294965248  ;;  %v355_v0 = vld [vmem:[#allocation6 + $0x38] sm:$0xff]  ;;  %v354_v1 = vld [vmem:[#allocation6 + $0x30] sm:$0xff]  ;;  %s483_s10 = smov [#allocation9]   ;;  %s272_s14 = sshll.u32 %s537_s5, 4  ;;  %s273_s14 = int_to_ptr.hbm [resolvable:$true] %s272_s14 }
   0xf   :  { %141 = vmatpush.bf16.msra.mxu0 %v355_v0  ;;  %v353_v2 = vld [vmem:[#allocation6 + $0x28] sm:$0xff]  ;;  %v352_v3 = vld [vmem:[#allocation6 + $0x20] sm:$0xff]  ;;  %v351_v4 = vld [vmem:[#allocation6 + $0x18] sm:$0xff]  ;;  %s270_s11 = sshll.u32 %s483_s10, 4  ;;  %s271_s11 = int_to_ptr.vmem [resolvable:$true] %s270_s11 }
  0x10   :  { %v350_v5 = vld [vmem:[#allocation6 + $0x10] sm:$0xff]  ;;  %v349_v6 = vld [vmem:[#allocation6 + $0x8] sm:$0xff]  ;;  %v348_v7 = vld [vmem:[#allocation6] sm:$0xff] }
  0x11   :  { %v71_v8 = vld [vmem:[#allocation3] sm:$0xff]  ;;  %v362_v11 = vld [vmem:[#allocation8 + $0x30] sm:$0xff]  ;;  %v361_v12 = vld [vmem:[#allocation8 + $0x28] sm:$0xff] }
  0x12   :  { %v72_v9 = vpack.c.bf16 %v71_v8, %v71_v8  ;;  %v363_v10 = vld [vmem:[#allocation8 + $0x38] sm:$0xff]  ;;  %v360_v13 = vld [vmem:[#allocation8 + $0x20] sm:$0xff]  ;;  %v358_v15 = vld [vmem:[#allocation8 + $0x10] sm:$0xff] }
  0x13   :  { %142 = vmatpush.bf16.msra.mxu0 %v354_v1  ;;  %240 = vmatpush.bf16.msra.mxu1 %v363_v10  ;;  %v359_v14 = vld [vmem:[#allocation8 + $0x18] sm:$0xff]  ;;  %v357_v16 = vld [vmem:[#allocation8 + $0x8] sm:$0xff]  ;;  %v356_v17 = vld [vmem:[#allocation8] sm:$0xff] }
  0x14   :  { %v370_v18 = vld [vmem:[%s534_s2] ss:$0 sm:$0xff] }
  0x15   :  { %v371_v37 = vld [vmem:[%s536_s4] ss:$0 sm:$0xff] }
  0x17   :  { %143 = vmatpush.bf16.msra.mxu0 %v353_v2  ;;  %241 = vmatpush.bf16.msra.mxu1 %v362_v11 }
  0x1b   :  { %144 = vmatpush.bf16.msra.mxu0 %v352_v3  ;;  %242 = vmatpush.bf16.msra.mxu1 %v361_v12 }
  0x1f   :  { %145 = vmatpush.bf16.msra.mxu0 %v351_v4  ;;  %243 = vmatpush.bf16.msra.mxu1 %v360_v13 }
  0x23   :  { %146 = vmatpush.bf16.msra.mxu0 %v350_v5  ;;  %244 = vmatpush.bf16.msra.mxu1 %v359_v14 }
  0x27   :  { %147 = vmatpush.bf16.msra.mxu0 %v349_v6  ;;  %245 = vmatpush.bf16.msra.mxu1 %v358_v15 }
  0x2b   :  { %148 = vmatpush.bf16.msra.mxu0 %v348_v7  ;;  %246 = vmatpush.bf16.msra.mxu1 %v357_v16 }
  0x2e   :  { %149 = vmatmul.bf16.vlgmr.msra.gmra.mxu0 %v72_v9 }
  0x2f   :  { %247 = vmatpush.bf16.msra.mxu1 %v356_v17 }
  0xab   :  { %v150_v19 = vpop.f32.mrf.mxu0 }
  0xac   :  { %v151_v20 = vadd.f32 %v370_v18, %v150_v19 }
  0xae   :  { %v315_v21 = vmul.f32 -1.442695, %v151_v20 }
  0xb0   :  { %372 = vpow2.f32 %v315_v21 }
  0xb3   :  { %v152_v22 = vpop.f32.mrf.mxu0 }
  0xb6   :  { %v373_v23 = vpop.eup %372 }
  0xb7   :  { %v157_v24 = vadd.f32 1.0, %v373_v23 }
  0xb9   :  { %374 = vrcp.f32 %v157_v24  ;;  %v169_v28 = vand.u32 2147483648, %v157_v24  ;;  %v167_v30 = vand.u32 2147483647, %v157_v24  ;;  %vm163_vm1 = vweird.f32 %v157_v24 }
  0xbb   :  { %v170_v32 = vor.u32 1.1754944e-38, %v169_v28  ;;  %vm168_vm3 = vcmp.eq.f32.partialorder %v167_v30, 8.507059e+37 }
  0xbf   :  { %v375_v25 = vpop.eup %374 }
  0xc0   :  { %v159_v26 = vmul.f32 %v375_v25, %v157_v24  ;;  %vm164_vm0 = vweird.f32 %v375_v25 }
  0xc1   :  { %vm165_vm2 = vmor %vm163_vm1, %vm164_vm0 }
  0xc2   :  { %v160_v27 = vsub.f32 1.0, %v159_v26 }
  0xc4   :  { %v161_v29 = vmul.f32 %v375_v25, %v160_v27 }
  0xc6   :  { %v162_v31 = vadd.f32 %v375_v25, %v161_v29 }
  0xc8   :  { %v166_v33 = vsel %vm165_vm2, %v375_v25, %v162_v31 }
  0xc9   :  { %v171_v34 = vsel %vm168_vm3, %v170_v32, %v166_v33 }
  0xca   :  { %v173_v35 = vmul.f32 %v171_v34, %v151_v20 }
  0xcc   :  { %v175_v36 = vpack.c.bf16 %v173_v35, %v173_v35 }
  0xce   :  { %248 = vmatmul.bf16.vlgmr.msra.gmra.mxu1 %v175_v36 }
 0x14b   :  { %v249_v38 = vpop.f32.mrf.mxu1 }
 0x14c   :  { %v263_v39 = vadd.f32 %v371_v37, %v249_v38 }
 0x14e   :  { %264 = vst [vmem:[#allocation9] sm:$0xff] %v263_v39 }
 0x14f   :  { %275 = dma.vmem_to_hbm [thread:$0]  %s271_s11, 128, %s273_s14, [#allocation5]  }
 0x153   :  { %v251_v40 = vpop.f32.mrf.mxu1 }
 0x154   :  { %476 = dma.done.wait [#allocation5], 128  }
 0x155   :  { %477 = vsyncadd [#allocation5], 4294967168 }
 0x156   :  { %280 = vsyncpa [#allocation4], 1 }
 0x157   :  { %281 = vsyncpa [#allocation7], 1 }
 0x158   :  { %282 = vsyncpa [#allocation5], 1 }

</bundles_post_ra>
